<compile_context>
chip_gen: v6e
topology: v6e:2x2x1
jax: 0.10.0
libtpu: 0.0.40
codegen_flags: <defaults>
</compile_context>

<pallas_src>
import functools

import jax
import jax.numpy as jnp
from jax.experimental import pallas as pl
from jax.experimental.pallas import tpu as pltpu


def _round_up(x, m):
    return ((x + m - 1) // m) * m


def _layernorm_epilogue(y, gamma, beta, d_real):
    """LayerNorm over the real d_model; padded lanes of y are exactly zero."""
    d_pad = y.shape[-1]
    inv_d = 1.0 / d_real
    mean = jnp.sum(y, axis=-1, keepdims=True) * inv_d
    yc = y - mean
    if d_real != d_pad:
        lane = jax.lax.broadcasted_iota(jnp.int32, y.shape, 1)
        yc = jnp.where(lane < d_real, yc, 0.0)
    var = jnp.sum(yc * yc, axis=-1, keepdims=True) * inv_d
    inv = jax.lax.rsqrt(var + 1e-5)
    return yc * inv * gamma + beta          # padded lanes -> 0 (gamma/beta pad = 0)


def ffn_kernel_resident(x_ref, w1_ref, b1_ref, w2_ref, b2_ref,
                        gamma_ref, beta_ref, o_ref, *, d_real):
    """Full hidden dim resident in VMEM.  Grid = (token tiles,)."""
    x = x_ref[...]                                                   # (tm, D_pad)
    h = jnp.dot(x, w1_ref[...], preferred_element_type=jnp.float32)  # (tm, F_pad)
    h = jnp.maximum(h + b1_ref[...], 0.0)                            # bias + ReLU
    # NOTE: h is down-cast to the weight dtype (mixed precision for bf16 params).
    y = jnp.dot(h.astype(w2_ref.dtype), w2_ref[...],
                preferred_element_type=jnp.float32)
    y = y + b2_ref[...] + x.astype(jnp.float32)                      # + bias + residual
    o_ref[...] = _layernorm_epilogue(
        y, gamma_ref[...], beta_ref[...], d_real).astype(o_ref.dtype)


def ffn_kernel_tiled(x_ref, w1_ref, b1_ref, w2_ref, b2_ref,
                     gamma_ref, beta_ref, o_ref, acc_ref, *, d_real):
    """Hidden dim tiled on grid axis 1 ("arbitrary"); acc_ref is (tm, D_pad) f32."""
    k = pl.program_id(1)
    nk = pl.num_programs(1)

    @pl.when(k == 0)
    def _init():
        # Seed with residual + output bias: removes two (tm, D_pad) f32 adds
        # from the finalize epilogue (the init write happens anyway).
        acc_ref[...] = x_ref[...].astype(jnp.float32) + b2_ref[...]

    h = jnp.dot(x_ref[...], w1_ref[...], preferred_element_type=jnp.float32)
    h = jnp.maximum(h + b1_ref[...], 0.0)
    acc_ref[...] += jnp.dot(h.astype(w2_ref.dtype), w2_ref[...],
                            preferred_element_type=jnp.float32)

    @pl.when(k == nk - 1)
    def _finalize():
        o_ref[...] = _layernorm_epilogue(
            acc_ref[...], gamma_ref[...], beta_ref[...], d_real).astype(o_ref.dtype)


@functools.partial(jax.jit, static_argnames=("block_rows", "block_ff"))
def ffn_layer(tgt, w1, b1, w2, b2, gamma, beta, *, block_rows=512, block_ff=512):
    """tgt: (S, B, D); w1: (D, F); w2: (F, D); biases / norm params 1-D."""
    S, B, D = tgt.shape
    N = S * B
    F = w1.shape[1]
    x_item = tgt.dtype.itemsize
    w_item = w1.dtype.itemsize

    D_pad = _round_up(D, 128)
    F_full = _round_up(F, 128)

    # Conservative budget: fits under v7x's 64 MiB/TC physical VMEM with headroom;
    # trivially inside v5e/v6e's 128 MiB.
    VMEM_BUDGET = 40 * 1024 * 1024

    def footprint(tm, tf, ktiles):
        buf = 2                                               # pipeline double-buffers
        xb = buf * tm * D_pad * x_item                        # x tile
        ob = buf * tm * D_pad * x_item                        # out tile
        wb = buf * (D_pad * tf + tf * D_pad) * w_item         # w1 + w2 tiles
        sm = buf * (tf + 3 * D_pad) * 4                       # b1, b2, gamma, beta (f32)
        acc = (tm * D_pad * 4) if ktiles > 1 else 0           # f32 accumulator
        h = tm * tf * 4                                       # hidden activation
        return xb + ob + wb + sm + acc + h

    # --- token tile: minimize row-padding waste, keep >= 2 tiles for megacore ---
    ntiles = max(1, -(-N // block_rows))
    if ntiles == 1 and N > 8:
        ntiles = 2                                            # give both v7x TCs work
    tm = _round_up(-(-N // ntiles), 8)

    # --- hidden-dim tiling: full residency when VMEM allows, else tile on axis 1 ---
    if footprint(tm, F_full, 1) <= VMEM_BUDGET:
        tf = F_full
    else:
        tf = min(block_ff, F_full)
    F_pad = _round_up(F, tf)
    ktiles = F_pad // tf

    # shrink the token tile if we still overflow the budget
    while tm > 8 and footprint(tm, tf, ktiles) > VMEM_BUDGET:
        tm = max(8, _round_up(tm // 2, 8))
    N_pad = _round_up(N, tm)

    vmem_limit = int(min(48 * 1024 * 1024,
                         max(2 * footprint(tm, tf, ktiles) + 4 * 1024 * 1024,
                             32 * 1024 * 1024)))

    # --- pad (only when needed: each pad/slice is a full HBM round-trip) ---
    def pad2(m, r, c):
        return m if (r == 0 and c == 0) else jnp.pad(m, ((0, r), (0, c)))

    def pad1(v, n):
        return v if n == 0 else jnp.pad(v, (0, n))

    x = pad2(tgt.reshape(N, D), N_pad - N, D_pad - D)
    w1p = pad2(w1, D_pad - D, F_pad - F)
    w2p = pad2(w2, F_pad - F, D_pad - D)
    # Grid-invariant params: cast to f32 once here, zero-pad so padded lanes
    # contribute nothing / map to zero output.
    b1p = pad1(b1.astype(jnp.float32), F_pad - F).reshape(1, F_pad)
    b2p = pad1(b2.astype(jnp.float32), D_pad - D).reshape(1, D_pad)
    gp = pad1(gamma.astype(jnp.float32), D_pad - D).reshape(1, D_pad)
    bp = pad1(beta.astype(jnp.float32), D_pad - D).reshape(1, D_pad)

    if ktiles == 1:
        # Weights fully resident: grid-invariant specs, DMA'd from HBM once.
        kernel = functools.partial(ffn_kernel_resident, d_real=D)
        grid = (N_pad // tm,)
        in_specs = [
            pl.BlockSpec((tm, D_pad), lambda i: (i, 0)),       # x token tile
            pl.BlockSpec((D_pad, F_pad), lambda i: (0, 0)),    # w1 (invariant)
            pl.BlockSpec((1, F_pad), lambda i: (0, 0)),        # b1
            pl.BlockSpec((F_pad, D_pad), lambda i: (0, 0)),    # w2 (invariant)
            pl.BlockSpec((1, D_pad), lambda i: (0, 0)),        # b2
            pl.BlockSpec((1, D_pad), lambda i: (0, 0)),        # gamma
            pl.BlockSpec((1, D_pad), lambda i: (0, 0)),        # beta
        ]
        out_specs = pl.BlockSpec((tm, D_pad), lambda i: (i, 0))
        scratch = []
        dims = ("parallel",)
    else:
        # Hidden dim tiled (reduction axis last); weights streamed per F-tile.
        kernel = functools.partial(ffn_kernel_tiled, d_real=D)
        grid = (N_pad // tm, ktiles)
        in_specs = [
            pl.BlockSpec((tm, D_pad), lambda i, k: (i, 0)),    # x (resident across k)
            pl.BlockSpec((D_pad, tf), lambda i, k: (0, k)),    # w1 F-tile
            pl.BlockSpec((1, tf), lambda i, k: (0, k)),        # b1 F-tile
            pl.BlockSpec((tf, D_pad), lambda i, k: (k, 0)),    # w2 F-tile
            pl.BlockSpec((1, D_pad), lambda i, k: (0, 0)),     # b2 (invariant)
            pl.BlockSpec((1, D_pad), lambda i, k: (0, 0)),     # gamma
            pl.BlockSpec((1, D_pad), lambda i, k: (0, 0)),     # beta
        ]
        out_specs = pl.BlockSpec((tm, D_pad), lambda i, k: (i, 0))
        scratch = [pltpu.VMEM((tm, D_pad), jnp.float32)]
        dims = ("parallel", "arbitrary")

    out = pl.pallas_call(
        kernel,
        out_shape=jax.ShapeDtypeStruct((N_pad, D_pad), tgt.dtype),
        grid_spec=pltpu.PrefetchScalarGridSpec(
            num_scalar_prefetch=0,
            grid=grid,
            in_specs=in_specs,
            out_specs=out_specs,
            scratch_shapes=scratch,
        ),
        compiler_params=pltpu.CompilerParams(
            dimension_semantics=dims,
            vmem_limit_bytes=vmem_limit,
        ),
    )(x, w1p, b1p, w2p, b2p, gp, bp)

    if N_pad != N or D_pad != D:
        out = out[:N, :D]
    return out.reshape(S, B, D)


def _xavier_uniform(key, fan_in, fan_out, dtype=jnp.float32):
    # matches nn.init.xavier_uniform_ (gain=1)
    limit = jnp.sqrt(6.0 / (fan_in + fan_out))
    return jax.random.uniform(key, (fan_in, fan_out), dtype, -limit, limit)


if __name__ == "__main__":
    # Small shapes consistent with the module: seq=8, batch=2, d_model=32, dff=64.
    S, B, D, FF = 8, 2, 32, 64

    key = jax.random.PRNGKey(0)
    k_x, k_w1, k_w2 = jax.random.split(key, 3)

    tgt = jax.random.normal(k_x, (S, B, D), jnp.float32)

    # xavier_uniform weights, zero biases, LayerNorm gamma=1 / beta=0 (module defaults).
    w1 = _xavier_uniform(k_w1, D, FF)          # stored (in, out); torch keeps (out, in)
    b1 = jnp.zeros((FF,), jnp.float32)
    w2 = _xavier_uniform(k_w2, FF, D)
    b2 = jnp.zeros((D,), jnp.float32)
    gamma = jnp.ones((D,), jnp.float32)
    beta = jnp.zeros((D,), jnp.float32)

    out = ffn_layer(tgt, w1, b1, w2, b2, gamma, beta)
    jax.block_until_ready(out)

    # Pure-JAX reference (same math) to sanity-check the kernel.
    x = tgt.reshape(-1, D)
    h = jnp.maximum(x @ w1 + b1, 0.0)
    y = x + (h @ w2 + b2)
    mu = y.mean(-1, keepdims=True)
    var = ((y - mu) ** 2).mean(-1, keepdims=True)
    ref = ((y - mu) * jax.lax.rsqrt(var + 1e-5) * gamma + beta).reshape(S, B, D)
    assert jnp.allclose(out, ref, atol=1e-5, rtol=1e-5), "mismatch vs reference"

    print("KERNEL_OK")
</pallas_src>

<mosaic_0001>
module attributes {stable_mosaic.version = 11 : i64} {
  func.func @ffn_kernel_resident(%arg0: i32, %arg1: memref<8x128xf32, #tpu.memory_space<vmem>>, %arg2: memref<128x128xf32, #tpu.memory_space<vmem>>, %arg3: memref<1x128xf32, #tpu.memory_space<vmem>>, %arg4: memref<128x128xf32, #tpu.memory_space<vmem>>, %arg5: memref<1x128xf32, #tpu.memory_space<vmem>>, %arg6: memref<1x128xf32, #tpu.memory_space<vmem>>, %arg7: memref<1x128xf32, #tpu.memory_space<vmem>>, %arg8: memref<8x128xf32, #tpu.memory_space<vmem>>) attributes {dimension_semantics = [#tpu.dimension_semantics<parallel>], iteration_bounds = array<i64: 2>, scalar_prefetch = 0 : i64, scratch_operands = 0 : i64, tpu.core_type = #tpu.core_type<tc>, window_params = [{transform_indices = @transform_0, window_bounds = array<i64: 8, 128>}, {pipeline_mode = #tpu.pipeline_mode<synchronous>, transform_indices = @transform_1, window_bounds = array<i64: 128, 128>}, {pipeline_mode = #tpu.pipeline_mode<synchronous>, transform_indices = @transform_2, window_bounds = array<i64: 1, 128>}, {pipeline_mode = #tpu.pipeline_mode<synchronous>, transform_indices = @transform_3, window_bounds = array<i64: 128, 128>}, {pipeline_mode = #tpu.pipeline_mode<synchronous>, transform_indices = @transform_4, window_bounds = array<i64: 1, 128>}, {pipeline_mode = #tpu.pipeline_mode<synchronous>, transform_indices = @transform_5, window_bounds = array<i64: 1, 128>}, {pipeline_mode = #tpu.pipeline_mode<synchronous>, transform_indices = @transform_6, window_bounds = array<i64: 1, 128>}, {transform_indices = @transform_7, window_bounds = array<i64: 8, 128>}]} {
    %c0 = arith.constant 0 : index
    %c0_0 = arith.constant 0 : index
    %0 = vector.load %arg1[%c0, %c0_0] : memref<8x128xf32, #tpu.memory_space<vmem>>, vector<8x128xf32>
    %c0_1 = arith.constant 0 : index
    %c0_2 = arith.constant 0 : index
    %1 = vector.load %arg2[%c0_1, %c0_2] : memref<128x128xf32, #tpu.memory_space<vmem>>, vector<128x128xf32>
    %cst = arith.constant dense<0.000000e+00> : vector<8x128xf32>
    %2 = tpu.matmul %0, %1, %cst {dimension_numbers = #tpu.dot_dimension_numbers<[1], [0], [0], [1], [0, 0, 1, 1], [], []>} : vector<8x128xf32>, vector<128x128xf32>, vector<8x128xf32> -> vector<8x128xf32>
    %c0_3 = arith.constant 0 : index
    %c0_4 = arith.constant 0 : index
    %3 = vector.load %arg3[%c0_3, %c0_4] : memref<1x128xf32, #tpu.memory_space<vmem>>, vector<1x128xf32>
    %4 = vector.broadcast %3 : vector<1x128xf32> to vector<8x128xf32>
    %5 = arith.addf %2, %4 : vector<8x128xf32>
    %cst_5 = arith.constant 0.000000e+00 : f32
    %6 = vector.broadcast %cst_5 : f32 to vector<8x128xf32>
    %7 = arith.maximumf %5, %6 : vector<8x128xf32>
    %c0_6 = arith.constant 0 : index
    %c0_7 = arith.constant 0 : index
    %8 = vector.load %arg4[%c0_6, %c0_7] : memref<128x128xf32, #tpu.memory_space<vmem>>, vector<128x128xf32>
    %cst_8 = arith.constant dense<0.000000e+00> : vector<8x128xf32>
    %9 = tpu.matmul %7, %8, %cst_8 {dimension_numbers = #tpu.dot_dimension_numbers<[1], [0], [0], [1], [0, 0, 1, 1], [], []>} : vector<8x128xf32>, vector<128x128xf32>, vector<8x128xf32> -> vector<8x128xf32>
    %c0_9 = arith.constant 0 : index
    %c0_10 = arith.constant 0 : index
    %10 = vector.load %arg5[%c0_9, %c0_10] : memref<1x128xf32, #tpu.memory_space<vmem>>, vector<1x128xf32>
    %11 = vector.broadcast %10 : vector<1x128xf32> to vector<8x128xf32>
    %12 = arith.addf %9, %11 : vector<8x128xf32>
    %13 = arith.addf %12, %0 : vector<8x128xf32>
    %c0_11 = arith.constant 0 : index
    %c0_12 = arith.constant 0 : index
    %14 = vector.load %arg6[%c0_11, %c0_12] : memref<1x128xf32, #tpu.memory_space<vmem>>, vector<1x128xf32>
    %c0_13 = arith.constant 0 : index
    %c0_14 = arith.constant 0 : index
    %15 = vector.load %arg7[%c0_13, %c0_14] : memref<1x128xf32, #tpu.memory_space<vmem>>, vector<1x128xf32>
    %cst_15 = arith.constant dense<0.000000e+00> : vector<8xf32>
    %16 = vector.multi_reduction <add>, %13, %cst_15 [1] : vector<8x128xf32> to vector<8xf32>
    %17 = vector.shape_cast %16 : vector<8xf32> to vector<8x1xf32>
    %cst_16 = arith.constant 3.125000e-02 : f32
    %18 = vector.broadcast %cst_16 : f32 to vector<8x1xf32>
    %19 = arith.mulf %17, %18 : vector<8x1xf32>
    %20 = vector.broadcast %19 : vector<8x1xf32> to vector<8x128xf32>
    %21 = arith.subf %13, %20 : vector<8x128xf32>
    %22 = tpu.iota {dimensions = array<i32: 1>} : vector<8x128xi32>
    %c32_i32 = arith.constant 32 : i32
    %23 = vector.broadcast %c32_i32 : i32 to vector<8x128xi32>
    %24 = arith.cmpi slt, %22, %23 : vector<8x128xi32>
    %cst_17 = arith.constant 0.000000e+00 : f32
    %25 = vector.broadcast %cst_17 : f32 to vector<8x128xf32>
    %26 = arith.select %24, %21, %25 : vector<8x128xi1>, vector<8x128xf32>
    %27 = arith.mulf %26, %26 : vector<8x128xf32>
    %cst_18 = arith.constant dense<0.000000e+00> : vector<8xf32>
    %28 = vector.multi_reduction <add>, %27, %cst_18 [1] : vector<8x128xf32> to vector<8xf32>
    %29 = vector.shape_cast %28 : vector<8xf32> to vector<8x1xf32>
    %cst_19 = arith.constant 3.125000e-02 : f32
    %30 = vector.broadcast %cst_19 : f32 to vector<8x1xf32>
    %31 = arith.mulf %29, %30 : vector<8x1xf32>
    %cst_20 = arith.constant 9.99999974E-6 : f32
    %32 = vector.broadcast %cst_20 : f32 to vector<8x1xf32>
    %33 = arith.addf %31, %32 : vector<8x1xf32>
    %34 = math.rsqrt %33 : vector<8x1xf32>
    %35 = vector.broadcast %34 : vector<8x1xf32> to vector<8x128xf32>
    %36 = arith.mulf %26, %35 : vector<8x128xf32>
    %37 = vector.broadcast %14 : vector<1x128xf32> to vector<8x128xf32>
    %38 = arith.mulf %36, %37 : vector<8x128xf32>
    %39 = vector.broadcast %15 : vector<1x128xf32> to vector<8x128xf32>
    %40 = arith.addf %38, %39 : vector<8x128xf32>
    %c0_21 = arith.constant 0 : index
    %c0_22 = arith.constant 0 : index
    %41 = vector.load %arg8[%c0_21, %c0_22] : memref<8x128xf32, #tpu.memory_space<vmem>>, vector<8x128xf32>
    tpu.vector_store %arg8[%c0_21, %c0_22], %40 {strides = array<i32>} : memref<8x128xf32, #tpu.memory_space<vmem>>, vector<8x128xf32>,
    return
  }
  func.func @transform_0(%arg0: i32) -> (i32, i32) {
    %c0_i32 = arith.constant 0 : i32
    %c0_i32_0 = arith.constant 0 : i32
    return %arg0, %c0_i32 : i32, i32
  }
  func.func @transform_1(%arg0: i32) -> (i32, i32) {
    %c0_i32 = arith.constant 0 : i32
    %c0_i32_0 = arith.constant 0 : i32
    %c0_i32_1 = arith.constant 0 : i32
    return %c0_i32, %c0_i32_0 : i32, i32
  }
  func.func @transform_2(%arg0: i32) -> (i32, i32) {
    %c0_i32 = arith.constant 0 : i32
    %c0_i32_0 = arith.constant 0 : i32
    %c0_i32_1 = arith.constant 0 : i32
    return %c0_i32, %c0_i32_0 : i32, i32
  }
  func.func @transform_3(%arg0: i32) -> (i32, i32) {
    %c0_i32 = arith.constant 0 : i32
    %c0_i32_0 = arith.constant 0 : i32
    %c0_i32_1 = arith.constant 0 : i32
    return %c0_i32, %c0_i32_0 : i32, i32
  }
  func.func @transform_4(%arg0: i32) -> (i32, i32) {
    %c0_i32 = arith.constant 0 : i32
    %c0_i32_0 = arith.constant 0 : i32
    %c0_i32_1 = arith.constant 0 : i32
    return %c0_i32, %c0_i32_0 : i32, i32
  }
  func.func @transform_5(%arg0: i32) -> (i32, i32) {
    %c0_i32 = arith.constant 0 : i32
    %c0_i32_0 = arith.constant 0 : i32
    %c0_i32_1 = arith.constant 0 : i32
    return %c0_i32, %c0_i32_0 : i32, i32
  }
  func.func @transform_6(%arg0: i32) -> (i32, i32) {
    %c0_i32 = arith.constant 0 : i32
    %c0_i32_0 = arith.constant 0 : i32
    %c0_i32_1 = arith.constant 0 : i32
    return %c0_i32, %c0_i32_0 : i32, i32
  }
  func.func @transform_7(%arg0: i32) -> (i32, i32) {
    %c0_i32 = arith.constant 0 : i32
    %c0_i32_0 = arith.constant 0 : i32
    return %arg0, %c0_i32 : i32, i32
  }
}

</mosaic_0001>

<bundles_post_ra>
// kernel: ffn_layer.1
= control target key start
LH: loop header
LB: loop body
LE: loop exit
PB: predicated region body
PF: predicated region fallthrough
CT: control target
= control target key end

     0   :  { %12 = vsyncpa [#allocation3], 0  ;;  %s1063_s0 = inlined_call_operand.vmem [shape: f32[16,128], index: 0, kind: input, shape index: {}]   ;;  %s1064_s1 = inlined_call_operand.vmem [shape: f32[128,128], index: 1, kind: input, shape index: {}]   ;;  %s1065_s2 = inlined_call_operand.vmem [shape: f32[1,128], index: 2, kind: input, shape index: {}]   ;;  %s1066_s3 = inlined_call_operand.vmem [shape: f32[128,128], index: 3, kind: input, shape index: {}]   ;;  %s1067_s4 = inlined_call_operand.vmem [shape: f32[1,128], index: 4, kind: input, shape index: {}]   ;;  %s1068_s5 = inlined_call_operand.vmem [shape: f32[1,128], index: 5, kind: input, shape index: {}]   ;;  %s1069_s6 = inlined_call_operand.vmem [shape: f32[1,128], index: 6, kind: input, shape index: {}]   ;;  %s1070_s7 = inlined_call_operand.hbm [shape: f32[16,128], index: 7, kind: output, shape index: {}]  }
   0x1   :  { %14 = vsyncpa [#allocation3 + $0x1], 0  ;;  %s834_s24 = smov 0   ;;  %s836_s25 = smov 0  }
   0x2   :  { %s838_s26 = smov 0   ;;  %s840_s27 = smov 0  }
   0x3 LB: > { %s855_s28 = sadd.s32 4294967295, %s789_s27   ;;  %s568_s29 = sadd.s32 4294967294, %s789_s27   ;;  %s789_s27 = sphi %s840_s27, %s1076_s27   ;;  %s785_s26 = sphi %s838_s26, %s1075_s26   ;;  %s781_s25 = sphi %s836_s25, %s1074_s25   ;;  %s777_s24 = sphi %s834_s24, %s1073_s24  }
   0x4   : > { %s859_s30 = sadd.s32 1, %s789_s27   ;;  %s179_s8 = sadd.s32 1, %s785_s26 }
   0x5   : > { %s176_s9 = ssub.s32 %s789_s27, %s859_s30  ;;  %p189_p0 = scmp.ne.s32.totalorder %s785_s26, %s781_s25 }
   0x6   : > { %p177_p1 = scmp.eq.s32.totalorder %s176_s9, 0  ;;  %p190_p2 = scmp.eq.s32.totalorder %s855_s28, 1 }
   0x7   : > { %p195_p3 = scmp.ne.s32.totalorder %s781_s25, %s777_s24  ;;  %p196_p4 = scmp.eq.s32.totalorder %s568_s29, 1 }
   0x8   : > { %s870_s10 = scalar_select %p177_p1, %s785_s26, %s179_s8  }
   0x9   : > { %p872_p5 = por %p190_p2, %p189_p0  ;;  %p876_p6 = por %p196_p4, %p195_p3 }
   0xa   : > { %p571_p7 = scmp.ge.s32.totalorder %s789_s27, 1  ;;  %p239_p8 = scmp.lt.s32.totalorder %s789_s27, 3 }
   0xc   : > { %p240_p9 = pnand %p571_p7, %p239_p8 }
   0xd   : > { %p270_p10 = scmp.lt.s32.totalorder (!%p240_p9), %s855_s28, 1  ;;  %s267_s16 = sand.u32 (!%p240_p9), 1, %s781_s25  }
   0xe   : > { %243 = sbr.rel (%p240_p9) target bundleno = 766 (0x2fe), region = 48  ;;  %s572_s17 = sshll.u32 (!%p240_p9), %s267_s16, 3 }
   0xf   : > { %s579_s22 = sshll.u32 (!%p240_p9), %s855_s28, 7  ;;  %s269_s23 = scalar_lea.vmem (!%p240_p9), [#allocation2], %s572_s17 }
  0x10   : > { %s509_s29 = sshll.u32 (!%p240_p9), %s269_s23, 4  ;;  %s496_s14 = scalar_lea.sflag (!%p240_p9), [#allocation3], %s267_s16  ;;  %s510_s29 = int_to_ptr.vmem [resolvable:$true] %s509_s29 }
  0x11   : > { %s793_s18 = smov (!%p240_p9), [#allocation2]  }
  0x12   : > { %s733_s19 = sshll.u32 (!%p240_p9), %s793_s18, 4  ;;  %s734_s19 = int_to_ptr.vmem [resolvable:$false] %s733_s19 }
  0x13   : > { %v290_v0 = vld [vmem:[%s1064_s1 + $0x78] sm:$0xff]  ;;  %v791_v1 = vmov 0.0   ;;  %v289_v2 = vld [vmem:[%s1064_s1 + $0x70] sm:$0xff]  ;;  %vm792_vm0 = vmmov 0   ;;  %v288_v3 = vld [vmem:[%s1064_s1 + $0x68] sm:$0xff]  ;;  %s271_s8 = scalar_select %p270_p10, %s855_s28, 1  ;;  %v469_v44 = vlaneseq }
  0x14   : > { %616 = vmatprep.subr.mxu0 %v791_v1  ;;  %648 = vmatprep.mubr.msk.f32.mxu0 %vm792_vm0, %v791_v1  ;;  %v287_v4 = vld [vmem:[%s1064_s1 + $0x60] sm:$0xff]  ;;  %v384_v5 = vld [vmem:[%s1066_s3 + $0x78] sm:$0xff]  ;;  %v383_v6 = vld [vmem:[%s1066_s3 + $0x70] sm:$0xff]  ;;  %s735_s28 = scalar_lea.vmem %s734_s19, 256  ;;  %p736_p0 = scmp.lt.s32.totalorder %s510_s29, %s734_s19 }
  0x15   : > { %617 = vmatpush3.msra.mxu0 %v290_v0  ;;  %651 = vmatprep.subr.mxu1 %v791_v1  ;;  %v286_v7 = vld [vmem:[%s1064_s1 + $0x58] sm:$0xff]  ;;  %v382_v8 = vld [vmem:[%s1066_s3 + $0x68] sm:$0xff]  ;;  %v285_v9 = vld [vmem:[%s1064_s1 + $0x50] sm:$0xff]  ;;  %s573_s20 = sshll.u32 %s271_s8, 3  ;;  %v470_v45 = vand.u32 127, %v469_v44  ;;  %s507_s8 = scalar_lea.hbm %s1070_s7, %s579_s22 }
  0x16   : > { %618 = vmatprep.subr.mxu0 %v791_v1  ;;  %683 = vmatprep.mubr.msk.f32.mxu1 %vm792_vm0, %v791_v1  ;;  %v381_v10 = vld [vmem:[%s1066_s3 + $0x60] sm:$0xff]  ;;  %v284_v11 = vld [vmem:[%s1064_s1 + $0x48] sm:$0xff]  ;;  %v380_v12 = vld [vmem:[%s1066_s3 + $0x58] sm:$0xff]  ;;  %s273_s15 = scalar_lea.vmem %s1063_s0, %s573_s20 }
  0x17   : > { %619 = vmatpush3.msra.mxu0 %v289_v2  ;;  %652 = vmatpush3.msra.mxu1 %v384_v5  ;;  %v283_v13 = vld [vmem:[%s1064_s1 + $0x40] sm:$0xff]  ;;  %v379_v14 = vld [vmem:[%s1066_s3 + $0x50] sm:$0xff]  ;;  %v282_v15 = vld [vmem:[%s1064_s1 + $0x38] sm:$0xff]  ;;  %vm471_vm1 = vcmp.lt.s32.totalorder %v470_v45, 32 }
  0x18   : > { %620 = vmatprep.subr.mxu0 %v791_v1  ;;  %653 = vmatprep.subr.mxu1 %v791_v1  ;;  %v378_v16 = vld [vmem:[%s1066_s3 + $0x48] sm:$0xff]  ;;  %v281_v17 = vld [vmem:[%s1064_s1 + $0x30] sm:$0xff]  ;;  %v377_v18 = vld [vmem:[%s1066_s3 + $0x40] sm:$0xff] }
  0x19   : > { %621 = vmatpush3.msra.mxu0 %v288_v3  ;;  %654 = vmatpush3.msra.mxu1 %v383_v6  ;;  %v280_v19 = vld [vmem:[%s1064_s1 + $0x28] sm:$0xff]  ;;  %v376_v20 = vld [vmem:[%s1066_s3 + $0x38] sm:$0xff]  ;;  %v279_v21 = vld [vmem:[%s1064_s1 + $0x20] sm:$0xff] }
  0x1a   : > { %622 = vmatprep.subr.mxu0 %v791_v1  ;;  %655 = vmatprep.subr.mxu1 %v791_v1  ;;  %v375_v22 = vld [vmem:[%s1066_s3 + $0x30] sm:$0xff]  ;;  %v278_v23 = vld [vmem:[%s1064_s1 + $0x18] sm:$0xff]  ;;  %v374_v24 = vld [vmem:[%s1066_s3 + $0x28] sm:$0xff] }
  0x1b   : > { %623 = vmatpush3.msra.mxu0 %v287_v4  ;;  %656 = vmatpush3.msra.mxu1 %v382_v8  ;;  %v277_v25 = vld [vmem:[%s1064_s1 + $0x10] sm:$0xff]  ;;  %v373_v26 = vld [vmem:[%s1066_s3 + $0x20] sm:$0xff]  ;;  %v276_v27 = vld [vmem:[%s1064_s1 + $0x8] sm:$0xff] }
  0x1c   : > { %624 = vmatprep.subr.mxu0 %v791_v1  ;;  %657 = vmatprep.subr.mxu1 %v791_v1  ;;  %v372_v28 = vld [vmem:[%s1066_s3 + $0x18] sm:$0xff]  ;;  %v275_v29 = vld [vmem:[%s1064_s1] sm:$0xff]  ;;  %v371_v31 = vld [vmem:[%s1066_s3 + $0x10] sm:$0xff] }
  0x1d   : > { %625 = vmatpush3.msra.mxu0 %v286_v7  ;;  %658 = vmatpush3.msra.mxu1 %v381_v10  ;;  %v274_v30 = vld [vmem:[%s273_s15] sm:$0xff]  ;;  %v370_v32 = vld [vmem:[%s1066_s3 + $0x8] sm:$0xff]  ;;  %s729_s15 = scalar_lea.vmem %s510_s29, 128 }
  0x1e   : > { %626 = vmatprep.subr.mxu0 %v791_v1  ;;  %659 = vmatprep.subr.mxu1 %v791_v1  ;;  %v369_v33 = vld [vmem:[%s1066_s3] sm:$0xff]  ;;  %p730_p11 = scmp.ne.s32.totalorder %s510_s29, %s729_s15  ;;  %p737_p1 = scmp.lt.s32.totalorder %s735_s28, %s729_s15 }
  0x1f   : > { %627 = vmatpush3.msra.mxu0 %v285_v9  ;;  %660 = vmatpush3.msra.mxu1 %v380_v12  ;;  %v574_v34 = vld [vmem:[%s1065_s2] ss:$0 sm:$0xff] }
  0x20   : > { %628 = vmatprep.subr.mxu0 %v791_v1  ;;  %661 = vmatprep.subr.mxu1 %v791_v1  ;;  %v575_v39 = vld [vmem:[%s1067_s4] ss:$0 sm:$0xff]  ;;  %p731_p12 = pnand %p730_p11, %p872_p5  ;;  %p738_p2 = por %p737_p1, %p736_p0 }
  0x21   : > { %629 = vmatpush3.msra.mxu0 %v284_v11  ;;  %662 = vmatpush3.msra.mxu1 %v379_v14  ;;  %v576_v55 = vld [vmem:[%s1068_s5] ss:$0 sm:$0xff] }
  0x22   : > { %630 = vmatprep.subr.mxu0 %v791_v1  ;;  %663 = vmatprep.subr.mxu1 %v791_v1  ;;  %v577_v57 = vld [vmem:[%s1069_s6] ss:$0 sm:$0xff]  ;;  %p732_p13 = pneg %p731_p12 }
  0x23   : > { %631 = vmatpush3.msra.mxu0 %v283_v13  ;;  %664 = vmatpush3.msra.mxu1 %v378_v16 }
  0x24   : > { %632 = vmatprep.subr.mxu0 %v791_v1  ;;  %665 = vmatprep.subr.mxu1 %v791_v1  ;;  %p739_p3 = pnand %p738_p2, %p732_p13 }
  0x25   : > { %633 = vmatpush3.msra.mxu0 %v282_v15  ;;  %666 = vmatpush3.msra.mxu1 %v377_v18 }
  0x26   : > { %634 = vmatprep.subr.mxu0 %v791_v1  ;;  %667 = vmatprep.subr.mxu1 %v791_v1 }
  0x27   : > { %635 = vmatpush3.msra.mxu0 %v281_v17  ;;  %668 = vmatpush3.msra.mxu1 %v376_v20 }
  0x28   : > { %636 = vmatprep.subr.mxu0 %v791_v1  ;;  %669 = vmatprep.subr.mxu1 %v791_v1 }
  0x29   : > { %637 = vmatpush3.msra.mxu0 %v280_v19  ;;  %670 = vmatpush3.msra.mxu1 %v375_v22 }
  0x2a   : > { %638 = vmatprep.subr.mxu0 %v791_v1  ;;  %671 = vmatprep.subr.mxu1 %v791_v1 }
  0x2b   : > { %639 = vmatpush3.msra.mxu0 %v279_v21  ;;  %672 = vmatpush3.msra.mxu1 %v374_v24 }
  0x2c   : > { %640 = vmatprep.subr.mxu0 %v791_v1  ;;  %673 = vmatprep.subr.mxu1 %v791_v1 }
  0x2d   : > { %641 = vmatpush3.msra.mxu0 %v278_v23  ;;  %674 = vmatpush3.msra.mxu1 %v373_v26 }
  0x2e   : > { %642 = vmatprep.subr.mxu0 %v791_v1  ;;  %675 = vmatprep.subr.mxu1 %v791_v1 }
  0x2f   : > { %643 = vmatpush3.msra.mxu0 %v277_v25  ;;  %676 = vmatpush3.msra.mxu1 %v372_v28 }
  0x30   : > { %644 = vmatprep.subr.mxu0 %v791_v1  ;;  %677 = vmatprep.subr.mxu1 %v791_v1 }
  0x31   : > { %645 = vmatpush3.msra.mxu0 %v276_v27  ;;  %678 = vmatpush3.msra.mxu1 %v371_v31 }
  0x32   : > { %646 = vmatprep.subr.mxu0 %v791_v1  ;;  %679 = vmatprep.subr.mxu1 %v791_v1 }
  0x33   : > { %647 = vmatpush3.msra.mxu0 %v275_v29  ;;  %680 = vmatpush3.msra.mxu1 %v370_v32 }
  0x34   : > { %649 = vmatmul.mubr.f32.vlgmr.msra.gmra.mxu0 %v274_v30  ;;  %681 = vmatprep.subr.mxu1 %v791_v1 }
  0x35   : > { %682 = vmatpush3.msra.mxu1 %v369_v33 }
  0xf4   : > { %v364_v35 = vpop.f32.mrf.mxu0 }
  0xf5   : > { %v365_v36 = vadd.f32 %v574_v34, %v364_v35 }
  0xf6   : > { %v650_v37 = vpop.f32.mrf.mxu0 }
  0xf7   : > { %v368_v38 = vmax.f32 %v365_v36, 0.0 }
  0xf9   : > { %684 = vmatmul.mubr.f32.vlgmr.msra.gmra.mxu1 %v368_v38 }
 0x1b9   : > { %v458_v40 = vpop.f32.mrf.mxu1 }
 0x1ba   : > { %v459_v41 = vadd.f32 %v575_v39, %v458_v40 }
 0x1bb   : > { %v685_v42 = vpop.f32.mrf.mxu1 }
 0x1bc   : > { %v462_v43 = vadd.f32 %v459_v41, %v274_v30 }
 0x1be   : > { %465 = vadd.xlane.f32.xlu0 %v462_v43 }
 0x247   : > { %v466_v46 = vpop.xlane.xlu0 %465 }
 0x248   : > { %v467_v47 = vmul.f32 0.03125, %v466_v46 }
 0x24a   : > { %v468_v48 = vsub.f32 %v462_v43, %v467_v47 }
 0x24c   : > { %v472_v49 = vsel %vm471_vm1, %v468_v48, 0.0 }
 0x24d   : > { %v473_v50 = vmul.f32 %v472_v49, %v472_v49 }
 0x24f   : > { %474 = vadd.xlane.f32.xlu0 %v473_v50 }
 0x2d8   : > { %v475_v51 = vpop.xlane.xlu0 %474 }
 0x2d9   : > { %v476_v52 = vmul.f32 0.03125, %v475_v51 }
 0x2db   : > { %v477_v53 = vadd.f32 1e-05, %v476_v52 }
 0x2dd   : > { %727 = vrsqrt.f32 %v477_v53 }
 0x2ea   : > { %v728_v54 = vpop.eup %727 }
 0x2eb   : > { %v479_v56 = vmul.f32 %v728_v54, %v472_v49 }
 0x2ed   : > { %v486_v58 = vmul.f32 %v576_v55, %v479_v56 }
 0x2ef   : > { %v493_v59 = vadd.f32 %v577_v57, %v486_v58 }
 0x2f1   : > { %494 = vst [vmem:[%s269_s23] sm:$0xff] %v493_v59 }
 0x2f2   : > { %742 = shalt.err (!%p739_p3)
}
 0x2f3   : > { %s743_s17 = scalar_lea.hbm %s507_s8, 128  ;;  %s747_s21 = scalar_lea.hbm %s1070_s7, 256 }
 0x2f4   : > { %p744_p4 = scmp.ne.s32.totalorder %s507_s8, %s743_s17  ;;  %p748_p9 = scmp.lt.s32.totalorder %s507_s8, %s1070_s7 }
 0x2f5   : > { %p749_p10 = scmp.lt.s32.totalorder %s747_s21, %s743_s17 }
 0x2f6   : > { %p745_p7 = pnand %p744_p4, %p872_p5 }
 0x2f7   : > { %p750_p11 = por %p749_p10, %p748_p9 }
 0x2f8   : > { %p746_p8 = pneg %p745_p7 }
 0x2fa   : > { %p751_p12 = pnand %p750_p11, %p746_p8 }
 0x2fc   : > { %754 = shalt.err (!%p751_p12)
}
 0x2fd   : > { %686 = dma.vmem_to_hbm [thread:$0]  (%p872_p5), %s510_s29, 128, %s507_s8, %s496_s14  }
 0x2fe PF: > { %p692_p13 = scmp.ge.s32.totalorder %s789_s27, 2  ;;  %s521_s9 = sand.u32 1, %s777_s24  }
 0x2ff   : > { %s522_s13 = scalar_lea.sflag [#allocation3], %s521_s9 }
 0x300   : > { %p689_p0 = pnand %p692_p13, %p876_p6 }
 0x302   : > { %p690_p1 = pneg %p689_p0 }
 0x304   : > { %772 = dma.done.wait (%p690_p1), %s522_s13, 128  }
 0x305   : > { %774 = vsyncadd (%p690_p1), %s522_s13, 4294967168  ;;  %p17_p2 = scmp.ge.s32.totalorder %s859_s30, 4   ;;  %s1073_s24 = smov %s781_s25 }
 0x306   : > { %s1074_s25 = smov %s785_s26  ;;  %s1075_s26 = smov %s870_s10 }
 0x307   : > { %s1076_s27 = smov %s859_s30  ;;  %19 = sbr.rel (!%p17_p2) target bundleno = 3 (0x3), region = 83 }
 0x30c   :  { %527 = vsyncpa [#allocation3], 1 }
 0x30d   :  { %529 = vsyncpa [#allocation3 + $0x1], 1 }

</bundles_post_ra>
